<compile_context>
chip_gen: v6e
topology: v6e:2x2x1
jax: 0.10.0
libtpu: 0.0.40
codegen_flags: <defaults>
</compile_context>

<pallas_src>
import functools

import jax
import jax.numpy as jnp
from jax.experimental import pallas as pl
from jax.experimental.pallas import tpu as pltpu


def _sage_agg_kernel(a_ref, p_ref, r_ref, invdeg_ref, o_ref, acc_ref, *, activation):
    """One SAGEConv layer (projections pre-hoisted), tiled over (dest tile i, src tile k).

    Computes  out = act( diag(1/deg) @ A @ P + R )  for one dest-row tile.
    """
    k = pl.program_id(1)

    @pl.when(k == 0)
    def _():
        acc_ref[...] = jnp.zeros_like(acc_ref)

    # int8 -> bf16 VPU upcast (free: kernel is DMA-bound on A), then MXU matmul, f32 acc.
    a = a_ref[...].astype(jnp.bfloat16)
    acc_ref[...] += jnp.dot(a, p_ref[...], preferred_element_type=jnp.float32)

    @pl.when(k == pl.num_programs(1) - 1)
    def _():
        out = acc_ref[...] * invdeg_ref[...] + r_ref[...]   # mean-agg scale + root path
        if activation == "relu":
            out = jnp.maximum(out, 0.0)
        elif activation == "log_softmax":
            m = jnp.max(out, axis=1, keepdims=True)
            s = out - m
            out = s - jnp.log(jnp.sum(jnp.exp(s), axis=1, keepdims=True))
        o_ref[...] = out.astype(o_ref.dtype)


def _sage_agg(adj_i8, p_bf16, r_f32, inv_deg, *, activation, tile_m, tile_k, out_dtype):
    """out = act( diag(1/deg) @ A_counts @ P + R ),  A in int8, P in bf16, R/acc in f32."""
    n = adj_i8.shape[0]
    c_out = p_bf16.shape[1]
    grid = (n // tile_m, n // tile_k)

    kernel = functools.partial(_sage_agg_kernel, activation=activation)

    flops = 2 * n * n * c_out
    transcendentals = n * c_out if activation == "log_softmax" else 0
    bytes_accessed = (n * n                                   # A (int8), streamed once
                      + grid[0] * n * c_out * 2               # P (bf16) re-read per dest tile
                      + n * c_out * 4 + n * 4                 # R + 1/deg
                      + n * c_out * jnp.dtype(out_dtype).itemsize)

    return pl.pallas_call(
        kernel,
        out_shape=jax.ShapeDtypeStruct((n, c_out), out_dtype),
        grid_spec=pltpu.PrefetchScalarGridSpec(
            num_scalar_prefetch=0,
            grid=grid,
            in_specs=[
                pl.BlockSpec((tile_m, tile_k), lambda i, k: (i, k)),   # A edge counts (int8)
                pl.BlockSpec((tile_k, c_out), lambda i, k: (k, 0)),    # P = x @ W_l   (bf16)
                pl.BlockSpec((tile_m, c_out), lambda i, k: (i, 0)),    # R = x @ W_r+b (f32)
                pl.BlockSpec((tile_m, 1), lambda i, k: (i, 0)),        # 1/deg per dest row
            ],
            out_specs=pl.BlockSpec((tile_m, c_out), lambda i, k: (i, 0)),
            scratch_shapes=[pltpu.VMEM((tile_m, c_out), jnp.float32)],
        ),
        compiler_params=pltpu.CompilerParams(
            dimension_semantics=("parallel", "arbitrary")),
        cost_estimate=pl.CostEstimate(flops=flops,
                                      transcendentals=transcendentals,
                                      bytes_accessed=int(bytes_accessed)),
    )(adj_i8, p_bf16, r_f32, inv_deg)


def _pick_tile(n):
    # Largest of {512, 256, 128} that still leaves >= 2 dest-row grid steps when possible
    # (keeps the "parallel" axis shardable across the two v7x TensorCores).
    if n >= 1024:
        return 512
    if n >= 512:
        return 256
    return 128


def graphsage_forward(x, edge_index, params):
    """x: (N, Cin) float32; edge_index: (2, E) int32 (row 0 = src, row 1 = dst)."""
    n, c_in = x.shape
    src, dst = edge_index[0], edge_index[1]

    tile = _pick_tile(n)
    n_pad = pl.cdiv(n, tile) * tile

    # Unnormalized adjacency counts scattered straight into int8 storage.
    # (Duplicate-edge multiplicity > 127 per (dst, src) pair would overflow int8.)
    adj = jnp.zeros((n_pad, n_pad), jnp.int8).at[dst, src].add(jnp.int8(1))
    # Degrees directly from edge_index (no N^2 dense row-sum / extra cast passes).
    deg = jnp.zeros((n_pad, 1), jnp.float32).at[dst].add(1.0)
    inv_deg = 1.0 / jnp.maximum(deg, 1.0)          # isolated nodes -> agg = 0 (PyG behavior)

    x_pad = jnp.zeros((n_pad, c_in), jnp.float32).at[:n].set(x)

    # Layer 1: SAGEConv -> ReLU.  Projections hoisted; kernel only streams A @ P.
    p1 = (x_pad @ params["w1l"]).astype(jnp.bfloat16)
    r1 = x_pad @ params["w1r"] + params["b1"]
    h = _sage_agg(adj, p1, r1, inv_deg, activation="relu",
                  tile_m=tile, tile_k=tile, out_dtype=jnp.bfloat16)

    # Layer 2: SAGEConv -> log_softmax.
    h_f32 = h.astype(jnp.float32)
    p2 = (h_f32 @ params["w2l"]).astype(jnp.bfloat16)
    r2 = h_f32 @ params["w2r"] + params["b2"]
    z = _sage_agg(adj, p2, r2, inv_deg, activation="log_softmax",
                  tile_m=tile, tile_k=tile, out_dtype=jnp.float32)
    return z[:n]


def init_params(key, in_channels, out_channels, hidden_channels=8):
    ks = jax.random.split(key, 6)

    def glorot(k, fan_in, fan_out):
        scale = jnp.sqrt(6.0 / (fan_in + fan_out))
        return jax.random.uniform(k, (fan_in, fan_out), jnp.float32, -scale, scale)

    return {
        "w1l": glorot(ks[0], in_channels, hidden_channels),
        "w1r": glorot(ks[1], in_channels, hidden_channels),
        "b1":  jnp.zeros((1, hidden_channels), jnp.float32),
        "w2l": glorot(ks[2], hidden_channels, out_channels),
        "w2r": glorot(ks[3], hidden_channels, out_channels),
        "b2":  jnp.zeros((1, out_channels), jnp.float32),
    }


def _reference_forward(x, edge_index, params):
    """Pure-JAX dense f32 reference with PyG SAGEConv(mean) semantics."""
    n = x.shape[0]
    src, dst = edge_index[0], edge_index[1]
    adj = jnp.zeros((n, n), jnp.float32).at[dst, src].add(1.0)
    deg = jnp.maximum(adj.sum(axis=1, keepdims=True), 1.0)
    a = adj / deg
    h = jnp.maximum((a @ x) @ params["w1l"] + x @ params["w1r"] + params["b1"], 0.0)
    z = (a @ h) @ params["w2l"] + h @ params["w2r"] + params["b2"]
    return jax.nn.log_softmax(z, axis=1)


if __name__ == "__main__":
    key = jax.random.PRNGKey(0)
    k_x, k_e, k_p = jax.random.split(key, 3)

    num_nodes, in_channels, hidden_channels, out_channels = 256, 16, 8, 4
    num_edges = 1024

    x = jax.random.normal(k_x, (num_nodes, in_channels), jnp.float32)
    edge_index = jax.random.randint(k_e, (2, num_edges), 0, num_nodes, jnp.int32)

    params = init_params(k_p, in_channels, out_channels, hidden_channels)

    out = graphsage_forward(x, edge_index, params)
    jax.block_until_ready(out)

    assert out.shape == (num_nodes, out_channels)

    # log_softmax rows should sum to ~1 after exp (normalization done in f32 in-kernel).
    row_sums = jnp.exp(out).sum(axis=1)
    assert jnp.allclose(row_sums, jnp.ones_like(row_sums), atol=1e-5)

    # Match the pure-JAX dense f32 reference (bf16 A@P path + bf16 h -> loose tolerance).
    ref = _reference_forward(x, edge_index, params)
    assert float(jnp.max(jnp.abs(out - ref))) < 1e-1

    print("KERNEL_OK")
</pallas_src>

<mosaic_0001>
module attributes {stable_mosaic.version = 11 : i64} {
  func.func @_sage_agg_kernel(%arg0: i32, %arg1: i32, %arg2: memref<128x128xi8, #tpu.memory_space<vmem>>, %arg3: memref<128x8xbf16, #tpu.memory_space<vmem>>, %arg4: memref<128x8xf32, #tpu.memory_space<vmem>>, %arg5: memref<128x1xf32, #tpu.memory_space<vmem>>, %arg6: memref<128x8xbf16, #tpu.memory_space<vmem>>, %arg7: memref<128x8xf32, #tpu.memory_space<vmem>>) attributes {dimension_semantics = [#tpu.dimension_semantics<parallel>, #tpu.dimension_semantics<arbitrary>], iteration_bounds = array<i64: 2, 2>, scalar_prefetch = 0 : i64, scratch_operands = 1 : i64, tpu.core_type = #tpu.core_type<tc>, window_params = [{transform_indices = @transform_0, window_bounds = array<i64: 128, 128>}, {transform_indices = @transform_1, window_bounds = array<i64: 128, 8>}, {transform_indices = @transform_2, window_bounds = array<i64: 128, 8>}, {transform_indices = @transform_3, window_bounds = array<i64: 128, 1>}, {transform_indices = @transform_4, window_bounds = array<i64: 128, 8>}]} {
    %c0_i32 = arith.constant 0 : i32
    %0 = arith.cmpi eq, %arg1, %c0_i32 : i32
    %1 = arith.extui %0 : i1 to i32
    %c0_i32_0 = arith.constant 0 : i32
    %2 = arith.cmpi ne, %1, %c0_i32_0 : i32
    scf.if %2 {
      %cst_9 = arith.constant 0.000000e+00 : f32
      %13 = vector.broadcast %cst_9 : f32 to vector<128x8xf32>
      %c0_10 = arith.constant 0 : index
      %c0_11 = arith.constant 0 : index
      %14 = vector.load %arg7[%c0_10, %c0_11] : memref<128x8xf32, #tpu.memory_space<vmem>>, vector<128x8xf32>
      tpu.vector_store %arg7[%c0_10, %c0_11], %13 {strides = array<i32>} : memref<128x8xf32, #tpu.memory_space<vmem>>, vector<128x8xf32>,
    } else {
    }
    %c0 = arith.constant 0 : index
    %c0_1 = arith.constant 0 : index
    %3 = vector.load %arg2[%c0, %c0_1] : memref<128x128xi8, #tpu.memory_space<vmem>>, vector<128x128xi8>
    %4 = arith.sitofp %3 : vector<128x128xi8> to vector<128x128xbf16>
    %c0_2 = arith.constant 0 : index
    %c0_3 = arith.constant 0 : index
    %5 = vector.load %arg7[%c0_2, %c0_3] : memref<128x8xf32, #tpu.memory_space<vmem>>, vector<128x8xf32>
    %c0_4 = arith.constant 0 : index
    %c0_5 = arith.constant 0 : index
    %6 = vector.load %arg3[%c0_4, %c0_5] : memref<128x8xbf16, #tpu.memory_space<vmem>>, vector<128x8xbf16>
    %cst = arith.constant dense<0.000000e+00> : vector<128x8xf32>
    %7 = tpu.matmul %4, %6, %cst {dimension_numbers = #tpu.dot_dimension_numbers<[1], [0], [0], [1], [0, 0, 1, 1], [], []>} : vector<128x128xbf16>, vector<128x8xbf16>, vector<128x8xf32> -> vector<128x8xf32>
    %8 = arith.addf %5, %7 : vector<128x8xf32>
    %c0_6 = arith.constant 0 : index
    %c0_7 = arith.constant 0 : index
    %9 = vector.load %arg7[%c0_6, %c0_7] : memref<128x8xf32, #tpu.memory_space<vmem>>, vector<128x8xf32>
    tpu.vector_store %arg7[%c0_6, %c0_7], %8 {strides = array<i32>} : memref<128x8xf32, #tpu.memory_space<vmem>>, vector<128x8xf32>,
    %c1_i32 = arith.constant 1 : i32
    %10 = arith.cmpi eq, %arg1, %c1_i32 : i32
    %11 = arith.extui %10 : i1 to i32
    %c0_i32_8 = arith.constant 0 : i32
    %12 = arith.cmpi ne, %11, %c0_i32_8 : i32
    scf.if %12 {
      %c0_9 = arith.constant 0 : index
      %c0_10 = arith.constant 0 : index
      %13 = vector.load %arg7[%c0_9, %c0_10] : memref<128x8xf32, #tpu.memory_space<vmem>>, vector<128x8xf32>
      %c0_11 = arith.constant 0 : index
      %c0_12 = arith.constant 0 : index
      %14 = vector.load %arg5[%c0_11, %c0_12] : memref<128x1xf32, #tpu.memory_space<vmem>>, vector<128x1xf32>
      %15 = vector.broadcast %14 : vector<128x1xf32> to vector<128x8xf32>
      %16 = arith.mulf %13, %15 : vector<128x8xf32>
      %c0_13 = arith.constant 0 : index
      %c0_14 = arith.constant 0 : index
      %17 = vector.load %arg4[%c0_13, %c0_14] : memref<128x8xf32, #tpu.memory_space<vmem>>, vector<128x8xf32>
      %18 = arith.addf %16, %17 : vector<128x8xf32>
      %cst_15 = arith.constant 0.000000e+00 : f32
      %19 = vector.broadcast %cst_15 : f32 to vector<128x8xf32>
      %20 = arith.maximumf %18, %19 : vector<128x8xf32>
      %21 = arith.truncf %20 : vector<128x8xf32> to vector<128x8xbf16>
      %c0_16 = arith.constant 0 : index
      %c0_17 = arith.constant 0 : index
      %22 = vector.load %arg6[%c0_16, %c0_17] : memref<128x8xbf16, #tpu.memory_space<vmem>>, vector<128x8xbf16>
      tpu.vector_store %arg6[%c0_16, %c0_17], %21 {strides = array<i32>} : memref<128x8xbf16, #tpu.memory_space<vmem>>, vector<128x8xbf16>,
    } else {
    }
    return
  }
  func.func @transform_0(%arg0: i32, %arg1: i32) -> (i32, i32) {
    %c0_i32 = arith.constant 0 : i32
    return %arg0, %arg1 : i32, i32
  }
  func.func @transform_1(%arg0: i32, %arg1: i32) -> (i32, i32) {
    %c0_i32 = arith.constant 0 : i32
    %c0_i32_0 = arith.constant 0 : i32
    return %arg1, %c0_i32 : i32, i32
  }
  func.func @transform_2(%arg0: i32, %arg1: i32) -> (i32, i32) {
    %c0_i32 = arith.constant 0 : i32
    %c0_i32_0 = arith.constant 0 : i32
    return %arg0, %c0_i32 : i32, i32
  }
  func.func @transform_3(%arg0: i32, %arg1: i32) -> (i32, i32) {
    %c0_i32 = arith.constant 0 : i32
    %c0_i32_0 = arith.constant 0 : i32
    return %arg0, %c0_i32 : i32, i32
  }
  func.func @transform_4(%arg0: i32, %arg1: i32) -> (i32, i32) {
    %c0_i32 = arith.constant 0 : i32
    %c0_i32_0 = arith.constant 0 : i32
    return %arg0, %c0_i32 : i32, i32
  }
}

</mosaic_0001>

<bundles_post_ra>
// kernel: tpu_custom_call.1
= control target key start
LH: loop header
LB: loop body
LE: loop exit
PB: predicated region body
PF: predicated region fallthrough
CT: control target
= control target key end

     0   :  { %s1225_s15 = smov 0   ;;  %s1227_s16 = smov 0   ;;  %s1443_s0 = inlined_call_operand.vmem [shape: s8[256,256], index: 0, kind: input, shape index: {}]   ;;  %s1444_s1 = inlined_call_operand.vmem [shape: bf16[256,8], index: 1, kind: input, shape index: {}]   ;;  %s1445_s2 = inlined_call_operand.vmem [shape: f32[256,8], index: 2, kind: input, shape index: {}]   ;;  %s1446_s3 = inlined_call_operand.vmem [shape: f32[256,1], index: 3, kind: input, shape index: {}]   ;;  %s1447_s4 = inlined_call_operand.vmem [shape: bf16[256,8], index: 4, kind: output, shape index: {}]  }
   0x1   :  { %s1229_s17 = smov 0   ;;  %s1231_s18 = smov 0  }
   0x2   :  { %s1233_s19 = smov 0   ;;  %s1235_s20 = smov 0  }
   0x3   :  { %s1237_s21 = smov 0  }
   0x4 LB: > { %s23_s22 = sadd.s32 1, %s1188_s19  ;;  %s26_s23 = sadd.s32 1, %s1192_s20  ;;  %s1196_s21 = sphi %s1237_s21, %s14_s21   ;;  %s1192_s20 = sphi %s1235_s20, %s1453_s20   ;;  %s1188_s19 = sphi %s1233_s19, %s1452_s19   ;;  %s1184_s18 = sphi %s1231_s18, %s1451_s18   ;;  %s1180_s17 = sphi %s1229_s17, %s1450_s17   ;;  %s1176_s16 = sphi %s1227_s16, %s1449_s16   ;;  %s1172_s15 = sphi %s1225_s15, %s1448_s15  }
   0x5   : > { %p24_p0 = scmp.ge.s32.totalorder %s23_s22, 2  ;;  %p42_p1 = scmp.ne.s32.totalorder %s1176_s16, %s1172_s15 }
   0x6   : > { %p43_p2 = scmp.eq.s32.totalorder %s1196_s21, 0  ;;  %s35_s27 = sadd.s32 1, %s1176_s16 }
   0x7   : > { %s1455_s22 = smov (%p24_p0, %s23_s22), 0  ;;  %s1457_s23 = smov (!%p24_p0, %s26_s23), %s1192_s20 }
   0x8   : > { %p44_p3 = por %p43_p2, %p42_p1  ;;  %p28_p4 = scmp.ge.s32.totalorder %s1457_s23, 2 }
   0x9   : > { %s31_s24 = ssub.s32 %s1188_s19, %s1455_s22  ;;  %p950_p6 = scmp.ge.s32.totalorder %s1196_s21, 4 }
   0xa   : > { %s1459_s23 = smov (%p28_p4, %s1457_s23), 0 }
   0xb   : > { %s30_s25 = ssub.s32 %s1192_s20, %s1459_s23  ;;  %172 = sbr.rel (%p950_p6) target bundleno = 24 (0x18), region = 16 }
   0xc   : > { %s32_s26 = sor.u32 %s31_s24, %s30_s25 }
   0xd   : > { %p33_p5 = scmp.eq.s32.totalorder %s32_s26, 0 }
   0xf   : > { %s1276_s28 = scalar_select %p33_p5, %s1176_s16, %s35_s27  }
  0x10   : > { %175 = sbr.rel (!%p44_p3) target bundleno = 24 (0x18), region = 20  ;;  %s177_s29 = sand.u32 (%p44_p3), 1, %s1176_s16  }
  0x11   : > { %s993_s30 = sshll.u32 (%p44_p3), %s1192_s20, 3  ;;  %s951_s5 = sshll.u32 (%p44_p3), %s177_s29, 5 }
  0x12   : > { %s182_s6 = sadd.s32 (%p44_p3), %s1188_s19, %s993_s30  ;;  %s179_s11 = scalar_lea.vmem (%p44_p3), [#allocation3], %s951_s5 }
  0x13   : > { %s954_s7 = sshll.u32 (%p44_p3), %s182_s6, 3 }
  0x14   : > { %s184_s10 = scalar_lea.vmem (%p44_p3), %s1443_s0, %s954_s7 }
  0x15   : > { %v219_v0 = vld [vmem:[%s184_s10] sm:$0xff]  ;;  %v221_v1 = vld [vmem:[%s184_s10 + $0x10] sm:$0xff] }
  0x16   : > { %v223_v2 = vld [vmem:[%s184_s10 + $0x20] sm:$0xff]  ;;  %220 = vst [vmem:[%s179_s11] sm:$0xff] %v219_v0  ;;  %222 = vst [vmem:[%s179_s11 + $0x8] sm:$0xff] %v221_v1  ;;  %v225_v3 = vld [vmem:[%s184_s10 + $0x30] sm:$0xff] }
  0x17   : > { %224 = vst [vmem:[%s179_s11 + $0x10] sm:$0xff] %v223_v2  ;;  %226 = vst [vmem:[%s179_s11 + $0x18] sm:$0xff] %v225_v3 }
  0x18 PF: > { %p955_p7 = scmp.ge.s32.totalorder %s1196_s21, 1  ;;  %p258_p8 = scmp.lt.s32.totalorder %s1196_s21, 5 }
  0x1a   : > { %p259_p9 = pnand %p955_p7, %p258_p8 }
  0x1b   : > { %s265_s12 = sand.u32 (!%p259_p9), 1, %s1172_s15   ;;  %s957_s13 = sshll.u32 (!%p259_p9), %s1180_s17, 4 }
  0x1c   : > { %262 = sbr.rel (%p259_p9) target bundleno = 458 (0x1ca), region = 70  ;;  %s956_s14 = sshll.u32 (!%p259_p9), %s265_s12, 5 }
  0x1d   : > { %p307_p10 = scmp.lt.s32.totalorder (!%p259_p9), %s957_s13, 31  ;;  %s959_s24 = sshll.u32 (!%p259_p9), %s1184_s18, 4 }
  0x1e   : > { %p313_p11 = scmp.lt.s32.totalorder (!%p259_p9), %s959_s24, 31  ;;  %p965_p12 = scmp.ne.s32.totalorder (!%p259_p9), %s1180_s17, 0 }
  0x21   : > { %s1461_s13 = smov (!%p307_p10, %s957_s13), 31  ;;  %s1463_s24 = smov (!%p313_p11, %s959_s24), 31 }
  0x22   : > { %s958_s25 = sshll.u32 %s1461_s13, 2  ;;  %s960_s30 = sshll.u32 %s1463_s24, 3 }
  0x23   : > { %s1293_s29 = scalar_lea.vmem %s1444_s1, %s958_s25  ;;  %s964_s5 = sshll.u32 %s1463_s24, 2 }
  0x24   : > { %s1298_s8 = scalar_lea.vmem %s1445_s2, %s960_s30  ;;  %s1303_s18 = scalar_lea.vmem %s1446_s3, %s960_s30 }
  0x25   : > { %s1308_s12 = scalar_lea.vmem %s1447_s4, %s964_s5  ;;  %s1310_s13 = scalar_lea.vmem [#allocation3], %s956_s14 }
  0x26   : > { %334 = sbr.rel (%p965_p12) target bundleno = 52 (0x34), region = 78 }
  0x2b   : > { %vm335_vm0 = vcmask 64512   ;;  %v1198_v4 = vmov 0.0  }
  0x2c   : > { %336 = vst.msk [vmem:[#allocation2] sm:$0xff] %vm335_vm0, %v1198_v4  ;;  %337 = vst.msk [vmem:[#allocation2 + $0x8] sm:$0xff] %vm335_vm0, %v1198_v4 }
  0x2d   : > { %338 = vst.msk [vmem:[#allocation2 + $0x10] sm:$0xff] %vm335_vm0, %v1198_v4  ;;  %339 = vst.msk [vmem:[#allocation2 + $0x18] sm:$0xff] %vm335_vm0, %v1198_v4 }
  0x2e   : > { %340 = vst.msk [vmem:[#allocation2 + $0x20] sm:$0xff] %vm335_vm0, %v1198_v4  ;;  %341 = vst.msk [vmem:[#allocation2 + $0x28] sm:$0xff] %vm335_vm0, %v1198_v4 }
  0x2f   : > { %342 = vst.msk [vmem:[#allocation2 + $0x30] sm:$0xff] %vm335_vm0, %v1198_v4  ;;  %343 = vst.msk [vmem:[#allocation2 + $0x38] sm:$0xff] %vm335_vm0, %v1198_v4 }
  0x30   : > { %344 = vst.msk [vmem:[#allocation2 + $0x40] sm:$0xff] %vm335_vm0, %v1198_v4  ;;  %345 = vst.msk [vmem:[#allocation2 + $0x48] sm:$0xff] %vm335_vm0, %v1198_v4 }
  0x31   : > { %346 = vst.msk [vmem:[#allocation2 + $0x50] sm:$0xff] %vm335_vm0, %v1198_v4  ;;  %347 = vst.msk [vmem:[#allocation2 + $0x58] sm:$0xff] %vm335_vm0, %v1198_v4 }
  0x32   : > { %348 = vst.msk [vmem:[#allocation2 + $0x60] sm:$0xff] %vm335_vm0, %v1198_v4  ;;  %349 = vst.msk [vmem:[#allocation2 + $0x68] sm:$0xff] %vm335_vm0, %v1198_v4 }
  0x33   : > { %350 = vst.msk [vmem:[#allocation2 + $0x70] sm:$0xff] %vm335_vm0, %v1198_v4  ;;  %351 = vst.msk [vmem:[#allocation2 + $0x78] sm:$0xff] %vm335_vm0, %v1198_v4 }
  0x34 PF: > { %v1132_v5 = vld [vmem:[%s1293_s29 + $0x38] sm:$0xff]   ;;  %v1133_v6 = vld [vmem:[%s1293_s29 + $0x30] sm:$0xff]   ;;  %v1134_v7 = vld [vmem:[%s1293_s29 + $0x28] sm:$0xff]   ;;  %vm557_vm1 = vcmask 64512   ;;  %p974_p13 = scmp.ne.s32.totalorder %s1180_s17, 1 }
  0x35   : > { %1026 = vmatprep.subr.bf16.mxu0 %v1132_v5  ;;  %1058 = vmatprep.subr.bf16.mxu1 %v1132_v5  ;;  %v1135_v8 = vld [vmem:[%s1293_s29 + $0x20] sm:$0xff]   ;;  %v354_v10 = vld [vmem:[%s1310_s13 + $0x10] sm:$0xff]  ;;  %v1136_v13 = vld [vmem:[%s1293_s29 + $0x18] sm:$0xff]  }
  0x36   : > { %1027 = vmatpush3.bf16.msra.mxu0 %v1132_v5  ;;  %1066 = vmatpush3.bf16.msra.mxu1 %v1132_v5  ;;  %v352_v9 = vld [vmem:[%s1310_s13] sm:$0xff]  ;;  %v360_v12 = vunpack.c.l.s8.bf16 %v354_v10  ;;  %v1137_v14 = vld [vmem:[%s1293_s29 + $0x10] sm:$0xff]   ;;  %v1138_v15 = vld [vmem:[%s1293_s29 + $0x8] sm:$0xff]   ;;  %v361_v20 = vunpack.c.h.s8.bf16 %v354_v10 }
  0x37   : > { %1028 = vmatprep.subr.bf16.mxu0 %v1133_v6  ;;  %1059 = vmatprep.subr.bf16.mxu1 %v1133_v6  ;;  %v356_v11 = vunpack.c.l.s8.bf16 %v352_v9  ;;  %v1139_v16 = vld [vmem:[%s1293_s29] sm:$0xff]   ;;  %v353_v17 = vld [vmem:[%s1310_s13 + $0x8] sm:$0xff]  ;;  %v355_v18 = vld [vmem:[%s1310_s13 + $0x18] sm:$0xff]  ;;  %v357_v19 = vunpack.c.h.s8.bf16 %v352_v9 }
  0x38   : > { %1050 = vmatprep.mubr.bf16.mxu1 %v360_v12  ;;  %v358_v21 = vunpack.c.l.s8.bf16 %v353_v17  ;;  %v362_v22 = vunpack.c.l.s8.bf16 %v355_v18  ;;  %v359_v23 = vunpack.c.h.s8.bf16 %v353_v17  ;;  %v363_v24 = vunpack.c.h.s8.bf16 %v355_v18  ;;  %v366_v25 = vld [vmem:[#allocation2 + $0x10] sm:$0xff]  ;;  %v364_v29 = vld [vmem:[#allocation2] sm:$0xff]  ;;  %v367_v35 = vld [vmem:[#allocation2 + $0x18] sm:$0xff] }
  0x39   : > { %1042 = vmatprep.mubr.bf16.mxu0 %v356_v11  ;;  %v374_v26 = vld [vmem:[#allocation2 + $0x50] sm:$0xff]  ;;  %v372_v30 = vld [vmem:[#allocation2 + $0x40] sm:$0xff]  ;;  %v375_v36 = vld [vmem:[#allocation2 + $0x58] sm:$0xff] }
  0x3a   : > { %1029 = vmatpush3.bf16.msra.mxu0 %v1133_v6  ;;  %1067 = vmatpush3.bf16.msra.mxu1 %v1133_v6  ;;  %v365_v41 = vld [vmem:[#allocation2 + $0x8] sm:$0xff]  ;;  %v370_v47 = vld [vmem:[#allocation2 + $0x30] sm:$0xff]  ;;  %v368_v53 = vld [vmem:[#allocation2 + $0x20] sm:$0xff] }
  0x3b   : > { %1030 = vmatprep.subr.bf16.mxu0 %v1134_v7  ;;  %1060 = vmatprep.subr.bf16.mxu1 %v1134_v7  ;;  %v373_v42 = vld [vmem:[#allocation2 + $0x48] sm:$0xff]  ;;  %v378_v48 = vld [vmem:[#allocation2 + $0x70] sm:$0xff]  ;;  %v376_v54 = vld [vmem:[#allocation2 + $0x60] sm:$0xff] }
  0x3c   : > { %v371_v59 = vld [vmem:[#allocation2 + $0x38] sm:$0xff]  ;;  %v369_v1 = vld [vmem:[#allocation2 + $0x28] sm:$0xff] }
  0x3d   : > { %v379_v60 = vld [vmem:[#allocation2 + $0x78] sm:$0xff]  ;;  %v377_v2 = vld [vmem:[#allocation2 + $0x68] sm:$0xff] }
  0x3e   : > { %1031 = vmatpush3.bf16.msra.mxu0 %v1134_v7  ;;  %1068 = vmatpush3.bf16.msra.mxu1 %v1134_v7 }
  0x3f   : > { %1032 = vmatprep.subr.bf16.mxu0 %v1135_v8  ;;  %1061 = vmatprep.subr.bf16.mxu1 %v1135_v8 }
  0x42   : > { %1033 = vmatpush3.bf16.msra.mxu0 %v1135_v8  ;;  %1069 = vmatpush3.bf16.msra.mxu1 %v1135_v8 }
  0x43   : > { %1034 = vmatprep.subr.bf16.mxu0 %v1136_v13  ;;  %1062 = vmatprep.subr.bf16.mxu1 %v1136_v13 }
  0x46   : > { %1035 = vmatpush3.bf16.msra.mxu0 %v1136_v13  ;;  %1070 = vmatpush3.bf16.msra.mxu1 %v1136_v13 }
  0x47   : > { %1036 = vmatprep.subr.bf16.mxu0 %v1137_v14  ;;  %1063 = vmatprep.subr.bf16.mxu1 %v1137_v14 }
  0x4a   : > { %1037 = vmatpush3.bf16.msra.mxu0 %v1137_v14  ;;  %1071 = vmatpush3.bf16.msra.mxu1 %v1137_v14 }
  0x4b   : > { %1038 = vmatprep.subr.bf16.mxu0 %v1138_v15  ;;  %1064 = vmatprep.subr.bf16.mxu1 %v1138_v15 }
  0x4e   : > { %1039 = vmatpush3.bf16.msra.mxu0 %v1138_v15  ;;  %1072 = vmatpush3.bf16.msra.mxu1 %v1138_v15 }
  0x4f   : > { %1040 = vmatprep.subr.bf16.mxu0 %v1139_v16  ;;  %1065 = vmatprep.subr.bf16.mxu1 %v1139_v16 }
  0x52   : > { %1041 = vmatpush3.bf16.msra.mxu0 %v1139_v16  ;;  %1073 = vmatpush3.bf16.msra.mxu1 %v1139_v16 }
  0x55   : > { %1043 = vmatmul.mubr.bf16.vlgmr.msra.gmra.mxu0 %v357_v19  ;;  %1051 = vmatmul.mubr.bf16.vlgmr.msra.gmra.mxu1 %v361_v20 }
  0x56   : > { %1046 = vmatprep.mubr.bf16.mxu0 %v358_v21  ;;  %1054 = vmatprep.mubr.bf16.mxu1 %v362_v22 }
  0x5d   : > { %1047 = vmatmul.mubr.bf16.gmra.mxu0 %v359_v23  ;;  %1055 = vmatmul.mubr.bf16.gmra.mxu1 %v363_v24 }
 0x115   : > { %v1044_v27 = vpop.f32.mrf.mxu0  ;;  %v1052_v28 = vpop.f32.mrf.mxu1 }
 0x116   : > { %v543_v31 = vadd.f32 %v1044_v27, %v366_v25  ;;  %v551_v32 = vadd.f32 %v1052_v28, %v374_v26 }
 0x117   : > { %v478_v33 = vpop.f32.mrf.mxu0  ;;  %v510_v34 = vpop.f32.mrf.mxu1 }
 0x118   : > { %560 = vst.msk [vmem:[#allocation2 + $0x10] sm:$0xff] %vm557_vm1, %v543_v31  ;;  %568 = vst.msk [vmem:[#allocation2 + $0x50] sm:$0xff] %vm557_vm1, %v551_v32  ;;  %v541_v37 = vadd.f32 %v478_v33, %v364_v29  ;;  %v549_v38 = vadd.f32 %v510_v34, %v372_v30 }
 0x119   : > { %v1045_v39 = vpop.f32.mrf.mxu0  ;;  %v1053_v40 = vpop.f32.mrf.mxu1 }
 0x11a   : > { %558 = vst.msk [vmem:[#allocation2] sm:$0xff] %vm557_vm1, %v541_v37  ;;  %566 = vst.msk [vmem:[#allocation2 + $0x40] sm:$0xff] %vm557_vm1, %v549_v38  ;;  %v544_v43 = vadd.f32 %v1045_v39, %v367_v35  ;;  %v552_v44 = vadd.f32 %v1053_v40, %v375_v36 }
 0x11b   : > { %v481_v45 = vpop.f32.mrf.mxu0  ;;  %v513_v46 = vpop.f32.mrf.mxu1 }
 0x11c   : > { %561 = vst.msk [vmem:[#allocation2 + $0x18] sm:$0xff] %vm557_vm1, %v544_v43  ;;  %569 = vst.msk [vmem:[#allocation2 + $0x58] sm:$0xff] %vm557_vm1, %v552_v44  ;;  %v542_v49 = vadd.f32 %v481_v45, %v365_v41  ;;  %v550_v50 = vadd.f32 %v513_v46, %v373_v42 }
 0x11d   : > { %v1048_v51 = vpop.f32.mrf.mxu0  ;;  %v1056_v52 = vpop.f32.mrf.mxu1 }
 0x11e   : > { %559 = vst.msk [vmem:[#allocation2 + $0x8] sm:$0xff] %vm557_vm1, %v542_v49  ;;  %567 = vst.msk [vmem:[#allocation2 + $0x48] sm:$0xff] %vm557_vm1, %v550_v50  ;;  %v547_v55 = vadd.f32 %v1048_v51, %v370_v47  ;;  %v555_v56 = vadd.f32 %v1056_v52, %v378_v48 }
 0x11f   : > { %v494_v57 = vpop.f32.mrf.mxu0  ;;  %v526_v58 = vpop.f32.mrf.mxu1 }
 0x120   : > { %564 = vst.msk [vmem:[#allocation2 + $0x30] sm:$0xff] %vm557_vm1, %v547_v55  ;;  %572 = vst.msk [vmem:[#allocation2 + $0x70] sm:$0xff] %vm557_vm1, %v555_v56  ;;  %v545_v61 = vadd.f32 %v494_v57, %v368_v53  ;;  %v553_v62 = vadd.f32 %v526_v58, %v376_v54 }
 0x121   : > { %v1049_v63 = vpop.f32.mrf.mxu0  ;;  %v1057_v0 = vpop.f32.mrf.mxu1 }
 0x122   : > { %562 = vst.msk [vmem:[#allocation2 + $0x20] sm:$0xff] %vm557_vm1, %v545_v61  ;;  %570 = vst.msk [vmem:[#allocation2 + $0x60] sm:$0xff] %vm557_vm1, %v553_v62  ;;  %v548_v3 = vadd.f32 %v1049_v63, %v371_v59  ;;  %v556_v4 = vadd.f32 %v1057_v0, %v379_v60  ;;  %577 = sbr.rel (%p974_p13) target bundleno = 458 (0x1ca), region = 82 }
 0x123   : > { %v497_v5 = vpop.f32.mrf.mxu0  ;;  %v529_v6 = vpop.f32.mrf.mxu1 }
 0x124   : > { %565 = vst.msk [vmem:[#allocation2 + $0x38] sm:$0xff] %vm557_vm1, %v548_v3  ;;  %573 = vst.msk [vmem:[#allocation2 + $0x78] sm:$0xff] %vm557_vm1, %v556_v4  ;;  %v546_v7 = vadd.f32 %v497_v5, %v369_v1  ;;  %v554_v8 = vadd.f32 %v529_v6, %v377_v2 }
 0x126   : > { %563 = vst.msk [vmem:[#allocation2 + $0x28] sm:$0xff] %vm557_vm1, %v546_v7  ;;  %571 = vst.msk [vmem:[#allocation2 + $0x68] sm:$0xff] %vm557_vm1, %v554_v8 }
 0x127   : > { %v596_v9 = vld [vmem:[%s1303_s18 + $0x10] sm:$0xff]  ;;  %v594_v10 = vld [vmem:[%s1303_s18] sm:$0xff]  ;;  %v1199_v11 = vmov 0   ;;  %v597_v12 = vld [vmem:[%s1303_s18 + $0x18] sm:$0xff]  ;;  %vm818_vm2 = vcmask 60416  }
 0x128   : > { %1141 = vset.pattern.permute.xlu1 %v1199_v11  ;;  %1140 = vset.pattern.permute.xlu0 %v1199_v11  ;;  %v595_v13 = vld [vmem:[%s1303_s18 + $0x8] sm:$0xff]  ;;  %v598_v15 = vld [vmem:[%s1303_s18 + $0x20] sm:$0xff]  ;;  %v601_v16 = vld [vmem:[%s1303_s18 + $0x38] sm:$0xff] }
 0x129   : > { %622 = vperm.xlu1 %1141, %v596_v9   ;;  %612 = vperm.xlu0 %1140, %v594_v10   ;;  %v599_v14 = vld [vmem:[%s1303_s18 + $0x28] sm:$0xff]  ;;  %v600_v17 = vld [vmem:[%s1303_s18 + $0x30] sm:$0xff]  ;;  %v602_v19 = vld [vmem:[%s1303_s18 + $0x40] sm:$0xff] }
 0x12a   : > { %v603_v18 = vld [vmem:[%s1303_s18 + $0x48] sm:$0xff]  ;;  %v605_v20 = vld [vmem:[%s1303_s18 + $0x58] sm:$0xff]  ;;  %v604_v21 = vld [vmem:[%s1303_s18 + $0x50] sm:$0xff] }
 0x12b   : > { %v607_v22 = vld [vmem:[%s1303_s18 + $0x68] sm:$0xff]  ;;  %v606_v23 = vld [vmem:[%s1303_s18 + $0x60] sm:$0xff]  ;;  %v609_v24 = vld [vmem:[%s1303_s18 + $0x78] sm:$0xff] }
 0x12c   : > { %v608_v25 = vld [vmem:[%s1303_s18 + $0x70] sm:$0xff]  ;;  %v578_v27 = vld [vmem:[#allocation2] sm:$0xff]  ;;  %v581_v34 = vld [vmem:[#allocation2 + $0x18] sm:$0xff] }
 0x12d   : > { %627 = vperm.xlu1 %1141, %v597_v12   ;;  %617 = vperm.xlu0 %1140, %v595_v13   ;;  %v580_v26 = vld [vmem:[#allocation2 + $0x10] sm:$0xff]  ;;  %v706_v30 = vld [vmem:[%s1298_s8] sm:$0xff]  ;;  %v579_v35 = vld [vmem:[#allocation2 + $0x8] sm:$0xff] }
 0x12e   : > { %v708_v28 = vld [vmem:[%s1298_s8 + $0x10] sm:$0xff]  ;;  %v709_v38 = vld [vmem:[%s1298_s8 + $0x18] sm:$0xff]  ;;  %v707_v40 = vld [vmem:[%s1298_s8 + $0x8] sm:$0xff] }
 0x12f   : > { %v583_v46 = vld [vmem:[#allocation2 + $0x28] sm:$0xff]  ;;  %v582_v47 = vld [vmem:[#allocation2 + $0x20] sm:$0xff]  ;;  %v585_v60 = vld [vmem:[#allocation2 + $0x38] sm:$0xff] }
 0x130   : > { %v711_v52 = vld [vmem:[%s1298_s8 + $0x28] sm:$0xff]  ;;  %v710_v54 = vld [vmem:[%s1298_s8 + $0x20] sm:$0xff]  ;;  %v584_v61 = vld [vmem:[#allocation2 + $0x30] sm:$0xff] }
 0x131   : > { %637 = vperm.xlu1 %1141, %v599_v14   ;;  %632 = vperm.xlu0 %1140, %v598_v15   ;;  %v713_v2 = vld [vmem:[%s1298_s8 + $0x38] sm:$0xff]  ;;  %v712_v4 = vld [vmem:[%s1298_s8 + $0x30] sm:$0xff]  ;;  %v587_v10 = vld [vmem:[#allocation2 + $0x48] sm:$0xff] }
 0x132   : > { %v586_v11 = vld [vmem:[#allocation2 + $0x40] sm:$0xff] }
 0x135   : > { %647 = vperm.xlu1 %1141, %v601_v16   ;;  %642 = vperm.xlu0 %1140, %v600_v17   ;;  %v715_v16 = vld [vmem:[%s1298_s8 + $0x48] sm:$0xff] }
 0x139   : > { %657 = vperm.xlu1 %1141, %v603_v18   ;;  %652 = vperm.xlu0 %1140, %v602_v19   ;;  %v714_v18 = vld [vmem:[%s1298_s8 + $0x40] sm:$0xff] }
 0x13d   : > { %667 = vperm.xlu1 %1141, %v605_v20   ;;  %662 = vperm.xlu0 %1140, %v604_v21  }
 0x141   : > { %677 = vperm.xlu1 %1141, %v607_v22   ;;  %672 = vperm.xlu0 %1140, %v606_v23  }
 0x145   : > { %687 = vperm.xlu1 %1141, %v609_v24   ;;  %682 = vperm.xlu0 %1140, %v608_v25   ;;  %v589_v24 = vld [vmem:[#allocation2 + $0x58] sm:$0xff]  ;;  %v588_v25 = vld [vmem:[#allocation2 + $0x50] sm:$0xff] }
 0x1a4   : > { %v623_v29 = vpop.permute.xlu1 %622  ;;  %v613_v31 = vpop.permute.xlu0 %612 }
 0x1a5   : > { %v692_v32 = vmul.f32 %v623_v29, %v580_v26  ;;  %v690_v33 = vmul.f32 %v613_v31, %v578_v27 }
 0x1a7   : > { %v724_v36 = vadd.f32 %v708_v28, %v692_v32  ;;  %v722_v37 = vadd.f32 %v706_v30, %v690_v33  ;;  %v717_v30 = vld [vmem:[%s1298_s8 + $0x58] sm:$0xff]  ;;  %v716_v32 = vld [vmem:[%s1298_s8 + $0x50] sm:$0xff] }
 0x1a8   : > { %v628_v39 = vpop.permute.xlu1 %627  ;;  %v618_v41 = vpop.permute.xlu0 %617 }
 0x1a9   : > { %v740_v42 = vmax.f32 %v724_v36, 0.0  ;;  %v738_v43 = vmax.f32 %v722_v37, 0.0  ;;  %v693_v44 = vmul.f32 %v628_v39, %v581_v34  ;;  %v691_v45 = vmul.f32 %v618_v41, %v579_v35  ;;  %v590_v39 = vld [vmem:[#allocation2 + $0x60] sm:$0xff] }
 0x1ab   : > { %v996_v48 = vpack.c.bf16 %v740_v42, %v740_v42  ;;  %v994_v49 = vpack.c.bf16 %v738_v43, %v738_v43  ;;  %v725_v50 = vadd.f32 %v709_v38, %v693_v44  ;;  %v723_v51 = vadd.f32 %v707_v40, %v691_v45  ;;  %v591_v38 = vld [vmem:[#allocation2 + $0x68] sm:$0xff] }
 0x1ac   : > { %v638_v53 = vpop.permute.xlu1 %637  ;;  %v633_v55 = vpop.permute.xlu0 %632  ;;  %v719_v44 = vld [vmem:[%s1298_s8 + $0x68] sm:$0xff] }
 0x1ad   : > { %821 = vst.msk [vmem:[%s1308_s12 + $0x8] sm:$0xf] %vm818_vm2, %v996_v48  ;;  %819 = vst.msk [vmem:[%s1308_s12] sm:$0xf] %vm818_vm2, %v994_v49  ;;  %v741_v56 = vmax.f32 %v725_v50, 0.0  ;;  %v739_v57 = vmax.f32 %v723_v51, 0.0  ;;  %v695_v58 = vmul.f32 %v638_v53, %v583_v46  ;;  %v694_v59 = vmul.f32 %v633_v55, %v582_v47 }
 0x1ae   : > { %v718_v46 = vld [vmem:[%s1298_s8 + $0x60] sm:$0xff]  ;;  %v592_v53 = vld [vmem:[#allocation2 + $0x70] sm:$0xff] }
 0x1af   : > { %v997_v62 = vpack.c.bf16 %v741_v56, %v741_v56  ;;  %v995_v63 = vpack.c.bf16 %v739_v57, %v739_v57  ;;  %v727_v0 = vadd.f32 %v711_v52, %v695_v58  ;;  %v726_v1 = vadd.f32 %v710_v54, %v694_v59  ;;  %v593_v52 = vld [vmem:[#allocation2 + $0x78] sm:$0xff] }
 0x1b0   : > { %v648_v3 = vpop.permute.xlu1 %647  ;;  %v643_v5 = vpop.permute.xlu0 %642  ;;  %v721_v58 = vld [vmem:[%s1298_s8 + $0x78] sm:$0xff] }
 0x1b1   : > { %822 = vst.msk [vmem:[%s1308_s12 + $0xc] sm:$0xf] %vm818_vm2, %v997_v62  ;;  %820 = vst.msk [vmem:[%s1308_s12 + $0x4] sm:$0xf] %vm818_vm2, %v995_v63  ;;  %v743_v6 = vmax.f32 %v727_v0, 0.0  ;;  %v742_v7 = vmax.f32 %v726_v1, 0.0  ;;  %v697_v8 = vmul.f32 %v648_v3, %v585_v60  ;;  %v696_v9 = vmul.f32 %v643_v5, %v584_v61 }
 0x1b2   : > { %v720_v60 = vld [vmem:[%s1298_s8 + $0x70] sm:$0xff] }
 0x1b3   : > { %v999_v12 = vpack.c.bf16 %v743_v6, %v743_v6  ;;  %v998_v13 = vpack.c.bf16 %v742_v7, %v742_v7  ;;  %v729_v14 = vadd.f32 %v713_v2, %v697_v8  ;;  %v728_v15 = vadd.f32 %v712_v4, %v696_v9 }
 0x1b4   : > { %v658_v17 = vpop.permute.xlu1 %657  ;;  %v653_v19 = vpop.permute.xlu0 %652 }
 0x1b5   : > { %824 = vst.msk [vmem:[%s1308_s12 + $0x14] sm:$0xf] %vm818_vm2, %v999_v12  ;;  %823 = vst.msk [vmem:[%s1308_s12 + $0x10] sm:$0xf] %vm818_vm2, %v998_v13  ;;  %v745_v20 = vmax.f32 %v729_v14, 0.0  ;;  %v744_v21 = vmax.f32 %v728_v15, 0.0  ;;  %v699_v22 = vmul.f32 %v658_v17, %v587_v10  ;;  %v698_v23 = vmul.f32 %v653_v19, %v586_v11 }
 0x1b7   : > { %v1001_v26 = vpack.c.bf16 %v745_v20, %v745_v20  ;;  %v1000_v27 = vpack.c.bf16 %v744_v21, %v744_v21  ;;  %v731_v28 = vadd.f32 %v715_v16, %v699_v22  ;;  %v730_v29 = vadd.f32 %v714_v18, %v698_v23 }
 0x1b8   : > { %v668_v31 = vpop.permute.xlu1 %667  ;;  %v663_v33 = vpop.permute.xlu0 %662 }
 0x1b9   : > { %826 = vst.msk [vmem:[%s1308_s12 + $0x1c] sm:$0xf] %vm818_vm2, %v1001_v26  ;;  %825 = vst.msk [vmem:[%s1308_s12 + $0x18] sm:$0xf] %vm818_vm2, %v1000_v27  ;;  %v747_v34 = vmax.f32 %v731_v28, 0.0  ;;  %v746_v35 = vmax.f32 %v730_v29, 0.0  ;;  %v701_v36 = vmul.f32 %v668_v31, %v589_v24  ;;  %v700_v37 = vmul.f32 %v663_v33, %v588_v25 }
 0x1bb   : > { %v1003_v40 = vpack.c.bf16 %v747_v34, %v747_v34  ;;  %v1002_v41 = vpack.c.bf16 %v746_v35, %v746_v35  ;;  %v733_v42 = vadd.f32 %v717_v30, %v701_v36  ;;  %v732_v43 = vadd.f32 %v716_v32, %v700_v37 }
 0x1bc   : > { %v678_v45 = vpop.permute.xlu1 %677  ;;  %v673_v47 = vpop.permute.xlu0 %672 }
 0x1bd   : > { %828 = vst.msk [vmem:[%s1308_s12 + $0x24] sm:$0xf] %vm818_vm2, %v1003_v40  ;;  %827 = vst.msk [vmem:[%s1308_s12 + $0x20] sm:$0xf] %vm818_vm2, %v1002_v41  ;;  %v749_v48 = vmax.f32 %v733_v42, 0.0  ;;  %v748_v49 = vmax.f32 %v732_v43, 0.0  ;;  %v703_v50 = vmul.f32 %v678_v45, %v591_v38  ;;  %v702_v51 = vmul.f32 %v673_v47, %v590_v39 }
 0x1bf   : > { %v1005_v54 = vpack.c.bf16 %v749_v48, %v749_v48  ;;  %v1004_v55 = vpack.c.bf16 %v748_v49, %v748_v49  ;;  %v735_v56 = vadd.f32 %v719_v44, %v703_v50  ;;  %v734_v57 = vadd.f32 %v718_v46, %v702_v51 }
 0x1c0   : > { %v688_v59 = vpop.permute.xlu1 %687  ;;  %v683_v61 = vpop.permute.xlu0 %682 }
 0x1c1   : > { %830 = vst.msk [vmem:[%s1308_s12 + $0x2c] sm:$0xf] %vm818_vm2, %v1005_v54  ;;  %829 = vst.msk [vmem:[%s1308_s12 + $0x28] sm:$0xf] %vm818_vm2, %v1004_v55  ;;  %v751_v62 = vmax.f32 %v735_v56, 0.0  ;;  %v750_v63 = vmax.f32 %v734_v57, 0.0  ;;  %v705_v0 = vmul.f32 %v688_v59, %v593_v52  ;;  %v704_v1 = vmul.f32 %v683_v61, %v592_v53 }
 0x1c3   : > { %v1007_v2 = vpack.c.bf16 %v751_v62, %v751_v62  ;;  %v1006_v3 = vpack.c.bf16 %v750_v63, %v750_v63  ;;  %v737_v4 = vadd.f32 %v721_v58, %v705_v0  ;;  %v736_v5 = vadd.f32 %v720_v60, %v704_v1 }
 0x1c5   : > { %832 = vst.msk [vmem:[%s1308_s12 + $0x34] sm:$0xf] %vm818_vm2, %v1007_v2  ;;  %831 = vst.msk [vmem:[%s1308_s12 + $0x30] sm:$0xf] %vm818_vm2, %v1006_v3  ;;  %v753_v6 = vmax.f32 %v737_v4, 0.0  ;;  %v752_v7 = vmax.f32 %v736_v5, 0.0 }
 0x1c7   : > { %v1009_v8 = vpack.c.bf16 %v753_v6, %v753_v6  ;;  %v1008_v9 = vpack.c.bf16 %v752_v7, %v752_v7 }
 0x1c9   : > { %834 = vst.msk [vmem:[%s1308_s12 + $0x3c] sm:$0xf] %vm818_vm2, %v1009_v8  ;;  %833 = vst.msk [vmem:[%s1308_s12 + $0x38] sm:$0xf] %vm818_vm2, %v1008_v9 }
 0x1ca PF: > { %s14_s21 = sadd.s32 1, %s1196_s21   ;;  %s1448_s15 = smov %s1176_s16 }
 0x1cb   : > { %p11_p0 = scmp.ge.s32.totalorder %s14_s21, 6   ;;  %s1449_s16 = smov %s1276_s28 }
 0x1cc   : > { %s1450_s17 = smov %s1188_s19  ;;  %s1451_s18 = smov %s1192_s20 }
 0x1cd   : > { %s1452_s19 = smov %s1455_s22  ;;  %s1453_s20 = smov %s1459_s23 }
 0x1ce   :  { %13 = sbr.rel (!%p11_p0) target bundleno = 4 (0x4), region = 126 }

</bundles_post_ra>
